<compile_context>
chip_gen: v5e
topology: v5e:2x2
jax: 0.10.0
libtpu: 0.0.40
codegen_flags: <defaults>
</compile_context>

<pallas_src>
import functools

import jax
import jax.numpy as jnp
from jax.experimental import pallas as pl
from jax.experimental.pallas import tpu as pltpu

LANE = 128          # lane width of the padded output slab
SUBLANE = 8         # sublane width for the padded batch dim
N_CLASSES = 2
HIDDEN = 32
NEG_INF = -1e30     # bias padding for unused output lanes -> exp() underflows to exactly 0
                    # (safe only while the logits/bias stay f32 -- they do)


# --------------------------------------------------------------------------- #
# Kernel
# --------------------------------------------------------------------------- #
def node_network_kernel(x_ref, a_ref, bm_ref,
                        wcat1_ref, b1_ref,
                        wcat2_ref, b2_ref,
                        wfused_ref, bfused_ref,
                        out_ref, *, approx_recip):
    """Fused NodeNetwork forward pass.

    MXU dots run in the storage dtype of X (f32 or bf16) with f32 accumulation;
    all elementwise math (bias add, relu, softmax) stays in f32 (v5e has no
    bf16 VPU/EUP).  A arrives as int8 {0,1} and is upcast on-chip (exact).
    """
    mm_dtype = x_ref.dtype
    X = x_ref[...]
    A = a_ref[...].astype(mm_dtype)          # int8 {0,1} -> exact upcast, on-chip
    P = wcat1_ref.shape[1] // 2              # split point: 32 (v5e) or 128 (v6e/v7x)

    # ---- conv1: relu(A @ (X @ W2) + X @ W1 + b) ----
    # Both X-side dots share the same LHS -> single dot against concat([W2, W1]).
    # When P == 128 the pot/root slices are (.,128)-tile-aligned views (free).
    xw = jnp.dot(X, wcat1_ref[...], preferred_element_type=jnp.float32)       # [N, 2P]
    pot1, root1 = xw[:, :P], xw[:, P:]
    prop1 = jnp.dot(A, pot1.astype(mm_dtype), preferred_element_type=jnp.float32)
    h1 = jnp.maximum(prop1 + root1 + b1_ref[...], 0.0)                         # [N, P] f32
    h1_mm = h1.astype(mm_dtype)

    # ---- conv2: relu(A @ (h1 @ W2) + h1 @ W1 + b) ----
    hw = jnp.dot(h1_mm, wcat2_ref[...], preferred_element_type=jnp.float32)   # [N, 2P]
    pot2, root2 = hw[:, :P], hw[:, P:]
    prop2 = jnp.dot(A, pot2.astype(mm_dtype), preferred_element_type=jnp.float32)
    h2 = jnp.maximum(prop2 + root2 + b2_ref[...], 0.0)                         # [N, P] f32

    # ---- global sum pool: batch_mat @ h2 ----
    pooled = jnp.dot(bm_ref[...], h2.astype(mm_dtype),
                     preferred_element_type=jnp.float32)                       # [B_pad, P]

    # ---- fc1 + out_layer folded into one linear (no nonlinearity between them).
    #      wfused is [P, 128] zero-padded; bfused is [1, 128] padded with -1e30
    #      so padded lanes vanish under softmax -> lane-dense unmasked store. ----
    logits = jnp.dot(pooled, wfused_ref[...],
                     preferred_element_type=jnp.float32) + bfused_ref[...]     # [B_pad, 128]

    # ---- softmax over dim=1 (numerically stable; padded lanes contribute 0) ----
    m = jnp.max(logits, axis=1, keepdims=True)
    e = jnp.exp(logits - m)
    denom = jnp.sum(e, axis=1, keepdims=True)
    if approx_recip:
        out_ref[...] = e * pl.reciprocal(denom, approx=True)   # EUP slot, ~free
    else:
        out_ref[...] = e / denom                               # exact (verification path)


# --------------------------------------------------------------------------- #
# One-time preparation (hoisted out of the forward path)
# --------------------------------------------------------------------------- #
def _vmem_capacity_bytes():
    try:
        return int(pltpu.get_tpu_info().vmem_capacity_bytes)
    except Exception:
        return 128 * 1024 * 1024   # v5e/v6e physical VMEM; conservative fallback


def _default_lane_aligned():
    """256-wide MXU generations (v6e/v7x) -> 128-lane-aligned concat split."""
    try:
        kind = jax.devices()[0].device_kind.lower()
    except Exception:
        return False
    return ("v6" in kind) or ("v7" in kind)


def prepare_node_network(params, *, matmul_dtype=jnp.bfloat16,
                         lane_aligned=None, approx_recip=True):
    """Build kernel-ready parameters ONCE (concat / fold / pad / cast)."""
    if lane_aligned is None:
        lane_aligned = _default_lane_aligned()
    P = LANE if lane_aligned else HIDDEN
    f32 = jnp.float32
    mm = matmul_dtype
    F_in = params["conv1_W2"].shape[0]

    # Sibling conv weights concatenated: W2 into lanes [0:32], W1 into [P:P+32].
    wcat1 = jnp.zeros((F_in, 2 * P), f32)
    wcat1 = wcat1.at[:, :HIDDEN].set(params["conv1_W2"].astype(f32))
    wcat1 = wcat1.at[:, P:P + HIDDEN].set(params["conv1_W1"].astype(f32))
    wcat2 = jnp.zeros((P, 2 * P), f32)
    wcat2 = wcat2.at[:HIDDEN, :HIDDEN].set(params["conv2_W2"].astype(f32))
    wcat2 = wcat2.at[:HIDDEN, P:P + HIDDEN].set(params["conv2_W1"].astype(f32))

    # Conv biases zero-padded to P lanes (padded lanes stay exactly 0 through relu).
    b1 = jnp.zeros((1, P), f32).at[:, :HIDDEN].set(params["conv1_b"].astype(f32))
    b2 = jnp.zeros((1, P), f32).at[:, :HIDDEN].set(params["conv2_b"].astype(f32))

    # Fold fc1 + out_layer: logits = pooled @ (fc1_Wt @ out_Wt) + (fc1_b @ out_Wt + out_b).
    w_fused = params["fc1_Wt"] @ params["out_Wt"]                     # [32, 2]
    b_fused = params["fc1_b"] @ params["out_Wt"] + params["out_b"]    # [1, 2]
    w_pad = jnp.zeros((P, LANE), f32).at[:HIDDEN, :N_CLASSES].set(w_fused.astype(f32))
    b_pad = jnp.full((1, LANE), NEG_INF, f32).at[:, :N_CLASSES].set(b_fused.astype(f32))

    return {
        "wcat1": wcat1.astype(mm), "b1": b1,
        "wcat2": wcat2.astype(mm), "b2": b2,
        "wfused": w_pad, "bfused": b_pad,        # fc stays f32 (tiny, exact)
        "matmul_dtype": mm, "split": P, "approx_recip": bool(approx_recip),
    }


def prepare_graph_inputs(X, A, batch_mat, *, matmul_dtype=jnp.bfloat16,
                         a_storage_dtype=jnp.int8):
    """One-time storage-dtype conversion (stands in for keeping data at rest in
    these dtypes); the forward path never casts the big operands again."""
    mm = matmul_dtype
    B, N = batch_mat.shape
    B_pad = max(SUBLANE, ((B + SUBLANE - 1) // SUBLANE) * SUBLANE)
    bm = jnp.zeros((B_pad, N), mm).at[:B].set(batch_mat.astype(mm))
    return X.astype(mm), A.astype(a_storage_dtype), bm


# --------------------------------------------------------------------------- #
# Forward (pure pallas_call; no per-call prep)
# --------------------------------------------------------------------------- #
def node_network_forward(X_mm, A_i8, bm_mm, prepared):
    """Fused NodeNetwork forward.  Inputs must already be in storage dtypes
    (see prepare_graph_inputs); params must come from prepare_node_network.

    NOTE(scaling): at toy N everything fits comfortably in VMEM, so a grid-less
    call with whole-array blocks is correct (blocks equal full array dims).
    For N beyond a few thousand nodes, switch to a row-tiled grid over A
    (BlockSpec((TILE_N, N)) on A's rows, marked "parallel" so v7x's two
    TensorCores split the tiles, reduction axes "arbitrary"), keep the [N, P]
    pot/h activations in VMEM scratch, and accumulate the pool across the
    reduction axis with pl.when.  Budget ~2 buffers x TILE_N x N x 1B (int8 A):
    TILE_N ~ 1024-2048 on v6e (128 MiB VMEM), roughly half that on v7x
    (64 MiB) and under the v5e default scoped limit.  If A fits resident in
    VMEM (int8: N up to ~8-10K on v5e/v6e, ~6K on v7x) keep it resident
    instead and halve A traffic (it is otherwise streamed once per conv layer).
    Batch many graphs per call (large B) rather than dispatching tiny calls.
    """
    f32 = jnp.float32
    B_pad, N = bm_mm.shape
    _, F_in = X_mm.shape
    P = prepared["split"]

    args = (
        X_mm, A_i8, bm_mm,
        prepared["wcat1"], prepared["b1"],
        prepared["wcat2"], prepared["b2"],
        prepared["wfused"], prepared["bfused"],
    )

    total_bytes = sum(int(a.size) * a.dtype.itemsize for a in args) + B_pad * LANE * 4
    vmem_cap = _vmem_capacity_bytes()
    vmem_limit = int(min(3 * vmem_cap // 4,
                         max(16 * 1024 * 1024, 2 * total_bytes + (2 << 20))))

    cost = pl.CostEstimate(
        flops=(2 * N * F_in * 2 * P        # conv1 X-side (concat)
               + 2 * N * N * P             # conv1 propagation (A @ pot1)
               + 2 * N * P * 2 * P         # conv2 h-side (concat)
               + 2 * N * N * P             # conv2 propagation (A @ pot2)
               + 2 * B_pad * N * P         # global sum pool
               + 2 * B_pad * P * LANE),    # fused fc (lane padded)
        transcendentals=B_pad * LANE + B_pad,   # softmax exp + reciprocal
        bytes_accessed=total_bytes,
    )

    kernel = functools.partial(node_network_kernel,
                               approx_recip=prepared["approx_recip"])
    vmem_spec = pl.BlockSpec(memory_space=pltpu.MemorySpace.VMEM)
    out_padded = pl.pallas_call(
        kernel,
        out_shape=jax.ShapeDtypeStruct((B_pad, LANE), f32),
        in_specs=[vmem_spec] * len(args),
        out_specs=vmem_spec,
        compiler_params=pltpu.CompilerParams(vmem_limit_bytes=vmem_limit),
        cost_estimate=cost,
    )(*args)
    return out_padded      # caller slices [:B, :N_CLASSES]


# --------------------------------------------------------------------------- #
# Parameters & pure-JAX reference
# --------------------------------------------------------------------------- #
def make_params(key, input_features):
    """Deterministic synthetic parameters matching the torch module shapes/init."""
    ks = jax.random.split(key, 8)
    f32 = jnp.float32
    return {
        # BasicGraphConvolutionLayer(input_features, 32): torch.rand init, zero bias
        "conv1_W2": jax.random.uniform(ks[0], (input_features, HIDDEN), dtype=f32),
        "conv1_W1": jax.random.uniform(ks[1], (input_features, HIDDEN), dtype=f32),
        "conv1_b": jnp.zeros((1, HIDDEN), dtype=f32),
        # BasicGraphConvolutionLayer(32, 32)
        "conv2_W2": jax.random.uniform(ks[2], (HIDDEN, HIDDEN), dtype=f32),
        "conv2_W1": jax.random.uniform(ks[3], (HIDDEN, HIDDEN), dtype=f32),
        "conv2_b": jnp.zeros((1, HIDDEN), dtype=f32),
        # nn.Linear(32, 16): weight [16,32] stored transposed -> [32,16]
        "fc1_Wt": (jax.random.uniform(ks[4], (16, HIDDEN), dtype=f32, minval=-1.0, maxval=1.0)
                   * (1.0 / jnp.sqrt(32.0))).T,
        "fc1_b": (jax.random.uniform(ks[5], (16,), dtype=f32, minval=-1.0, maxval=1.0)
                  * (1.0 / jnp.sqrt(32.0))).reshape(1, 16),
        # nn.Linear(16, 2): weight [2,16] stored transposed -> [16,2]
        "out_Wt": (jax.random.uniform(ks[6], (2, 16), dtype=f32, minval=-1.0, maxval=1.0)
                   * (1.0 / jnp.sqrt(16.0))).T,
        "out_b": (jax.random.uniform(ks[7], (2,), dtype=f32, minval=-1.0, maxval=1.0)
                  * (1.0 / jnp.sqrt(16.0))).reshape(1, 2),
    }


def node_network_ref(X, A, batch_mat, p, matmul_dtype=jnp.float32):
    """Pure-JAX reference mirroring the torch forward pass.

    With matmul_dtype=f32 this is exactly the torch module's math; with bf16 it
    applies the same bf16-matmul-input / f32-accumulate policy as the kernel.
    """
    mm = matmul_dtype
    dot = lambda a, b: jnp.dot(a.astype(mm), b.astype(mm),
                               preferred_element_type=jnp.float32)
    h1 = jax.nn.relu(dot(A, dot(X, p["conv1_W2"])) + dot(X, p["conv1_W1"]) + p["conv1_b"])
    h2 = jax.nn.relu(dot(A, dot(h1, p["conv2_W2"])) + dot(h1, p["conv2_W1"]) + p["conv2_b"])
    pooled = dot(batch_mat, h2)
    z = pooled @ p["fc1_Wt"] + p["fc1_b"]
    logits = z @ p["out_Wt"] + p["out_b"]
    return jax.nn.softmax(logits, axis=1)


# --------------------------------------------------------------------------- #
# Demo / correctness harness
# --------------------------------------------------------------------------- #
if __name__ == "__main__":
    key = jax.random.PRNGKey(0)
    k_x, k_a, k_p = jax.random.split(key, 3)

    # Small synthetic graph batch: 2 graphs, 16 total nodes, 8 input features.
    N, F_IN, B = 16, 8, 2
    X = jax.random.uniform(k_x, (N, F_IN), dtype=jnp.float32)

    # Symmetric {0,1} adjacency with self-loops (exact in int8/bf16).
    a_rand = jax.random.uniform(k_a, (N, N), dtype=jnp.float32)
    A = ((a_rand + a_rand.T) > 1.0).astype(jnp.float32)
    A = jnp.minimum(A + jnp.eye(N, dtype=jnp.float32), 1.0)

    # batch_mat: first 8 nodes -> graph 0, last 8 nodes -> graph 1.
    batch_mat = jnp.zeros((B, N), dtype=jnp.float32)
    batch_mat = batch_mat.at[0, :8].set(1.0).at[1, 8:].set(1.0)

    params = make_params(k_p, F_IN)

    # --- f32 matmul path (torch-faithful), exact softmax division ---
    prep_f32 = prepare_node_network(params, matmul_dtype=jnp.float32, approx_recip=False)
    Xs, As, bms = prepare_graph_inputs(X, A, batch_mat, matmul_dtype=jnp.float32)
    out_f32 = jax.block_until_ready(
        node_network_forward(Xs, As, bms, prep_f32))[:B, :N_CLASSES]
    ref_f32 = node_network_ref(X, A, batch_mat, params, matmul_dtype=jnp.float32)
    assert out_f32.shape == (B, N_CLASSES)
    assert jnp.allclose(out_f32, ref_f32, atol=2e-3, rtol=2e-3), (out_f32, ref_f32)
    assert jnp.allclose(jnp.sum(out_f32, axis=1), jnp.ones((B,)), atol=1e-5)

    # --- bf16 matmul-input / int8-A-storage path (default production config),
    #     checked against a reference applying the same bf16-in / f32-acc policy ---
    prep_bf16 = prepare_node_network(params, matmul_dtype=jnp.bfloat16, approx_recip=True)
    Xs, As, bms = prepare_graph_inputs(X, A, batch_mat, matmul_dtype=jnp.bfloat16)
    out_bf16 = jax.block_until_ready(
        node_network_forward(Xs, As, bms, prep_bf16))[:B, :N_CLASSES]
    ref_bf16 = node_network_ref(X, A, batch_mat, params, matmul_dtype=jnp.bfloat16)
    assert out_bf16.shape == (B, N_CLASSES)
    assert jnp.allclose(out_bf16, ref_bf16, atol=1e-2, rtol=1e-2), (out_bf16, ref_bf16)
    assert jnp.allclose(jnp.sum(out_bf16, axis=1), jnp.ones((B,)), atol=2e-3)

    print("KERNEL_OK")
</pallas_src>

<mosaic_0001>
module attributes {stable_mosaic.version = 11 : i64} {
  func.func @node_network_kernel(%arg0: memref<16x8xf32, #tpu.memory_space<vmem>>, %arg1: memref<16x16xi8, #tpu.memory_space<vmem>>, %arg2: memref<8x16xf32, #tpu.memory_space<vmem>>, %arg3: memref<8x64xf32, #tpu.memory_space<vmem>>, %arg4: memref<1x32xf32, #tpu.memory_space<vmem>>, %arg5: memref<32x64xf32, #tpu.memory_space<vmem>>, %arg6: memref<1x32xf32, #tpu.memory_space<vmem>>, %arg7: memref<32x128xf32, #tpu.memory_space<vmem>>, %arg8: memref<1x128xf32, #tpu.memory_space<vmem>>, %arg9: memref<8x128xf32, #tpu.memory_space<vmem>>) attributes {dimension_semantics = [], scalar_prefetch = 0 : i64, scratch_operands = 0 : i64, tpu.core_type = #tpu.core_type<tc>} {
    %c0 = arith.constant 0 : index
    %c0_0 = arith.constant 0 : index
    %0 = vector.load %arg0[%c0, %c0_0] : memref<16x8xf32, #tpu.memory_space<vmem>>, vector<16x8xf32>
    %c0_1 = arith.constant 0 : index
    %c0_2 = arith.constant 0 : index
    %1 = vector.load %arg1[%c0_1, %c0_2] : memref<16x16xi8, #tpu.memory_space<vmem>>, vector<16x16xi8>
    %2 = arith.sitofp %1 : vector<16x16xi8> to vector<16x16xf32>
    %c0_3 = arith.constant 0 : index
    %c0_4 = arith.constant 0 : index
    %3 = vector.load %arg3[%c0_3, %c0_4] : memref<8x64xf32, #tpu.memory_space<vmem>>, vector<8x64xf32>
    %cst = arith.constant dense<0.000000e+00> : vector<16x64xf32>
    %4 = tpu.matmul %0, %3, %cst {dimension_numbers = #tpu.dot_dimension_numbers<[1], [0], [0], [1], [0, 0, 1, 1], [], []>} : vector<16x8xf32>, vector<8x64xf32>, vector<16x64xf32> -> vector<16x64xf32>
    %5 = vector.extract_strided_slice %4 {offsets = [0, 0], sizes = [16, 32], strides = [1, 1]} : vector<16x64xf32> to vector<16x32xf32>
    %6 = vector.extract_strided_slice %4 {offsets = [0, 32], sizes = [16, 32], strides = [1, 1]} : vector<16x64xf32> to vector<16x32xf32>
    %cst_5 = arith.constant dense<0.000000e+00> : vector<16x32xf32>
    %7 = tpu.matmul %2, %5, %cst_5 {dimension_numbers = #tpu.dot_dimension_numbers<[1], [0], [0], [1], [0, 0, 1, 1], [], []>} : vector<16x16xf32>, vector<16x32xf32>, vector<16x32xf32> -> vector<16x32xf32>
    %8 = arith.addf %7, %6 : vector<16x32xf32>
    %c0_6 = arith.constant 0 : index
    %c0_7 = arith.constant 0 : index
    %9 = vector.load %arg4[%c0_6, %c0_7] : memref<1x32xf32, #tpu.memory_space<vmem>>, vector<1x32xf32>
    %10 = vector.broadcast %9 : vector<1x32xf32> to vector<16x32xf32>
    %11 = arith.addf %8, %10 : vector<16x32xf32>
    %cst_8 = arith.constant 0.000000e+00 : f32
    %12 = vector.broadcast %cst_8 : f32 to vector<16x32xf32>
    %13 = arith.maximumf %11, %12 : vector<16x32xf32>
    %c0_9 = arith.constant 0 : index
    %c0_10 = arith.constant 0 : index
    %14 = vector.load %arg5[%c0_9, %c0_10] : memref<32x64xf32, #tpu.memory_space<vmem>>, vector<32x64xf32>
    %cst_11 = arith.constant dense<0.000000e+00> : vector<16x64xf32>
    %15 = tpu.matmul %13, %14, %cst_11 {dimension_numbers = #tpu.dot_dimension_numbers<[1], [0], [0], [1], [0, 0, 1, 1], [], []>} : vector<16x32xf32>, vector<32x64xf32>, vector<16x64xf32> -> vector<16x64xf32>
    %16 = vector.extract_strided_slice %15 {offsets = [0, 0], sizes = [16, 32], strides = [1, 1]} : vector<16x64xf32> to vector<16x32xf32>
    %17 = vector.extract_strided_slice %15 {offsets = [0, 32], sizes = [16, 32], strides = [1, 1]} : vector<16x64xf32> to vector<16x32xf32>
    %cst_12 = arith.constant dense<0.000000e+00> : vector<16x32xf32>
    %18 = tpu.matmul %2, %16, %cst_12 {dimension_numbers = #tpu.dot_dimension_numbers<[1], [0], [0], [1], [0, 0, 1, 1], [], []>} : vector<16x16xf32>, vector<16x32xf32>, vector<16x32xf32> -> vector<16x32xf32>
    %19 = arith.addf %18, %17 : vector<16x32xf32>
    %c0_13 = arith.constant 0 : index
    %c0_14 = arith.constant 0 : index
    %20 = vector.load %arg6[%c0_13, %c0_14] : memref<1x32xf32, #tpu.memory_space<vmem>>, vector<1x32xf32>
    %21 = vector.broadcast %20 : vector<1x32xf32> to vector<16x32xf32>
    %22 = arith.addf %19, %21 : vector<16x32xf32>
    %cst_15 = arith.constant 0.000000e+00 : f32
    %23 = vector.broadcast %cst_15 : f32 to vector<16x32xf32>
    %24 = arith.maximumf %22, %23 : vector<16x32xf32>
    %c0_16 = arith.constant 0 : index
    %c0_17 = arith.constant 0 : index
    %25 = vector.load %arg2[%c0_16, %c0_17] : memref<8x16xf32, #tpu.memory_space<vmem>>, vector<8x16xf32>
    %cst_18 = arith.constant dense<0.000000e+00> : vector<8x32xf32>
    %26 = tpu.matmul %25, %24, %cst_18 {dimension_numbers = #tpu.dot_dimension_numbers<[1], [0], [0], [1], [0, 0, 1, 1], [], []>} : vector<8x16xf32>, vector<16x32xf32>, vector<8x32xf32> -> vector<8x32xf32>
    %c0_19 = arith.constant 0 : index
    %c0_20 = arith.constant 0 : index
    %27 = vector.load %arg7[%c0_19, %c0_20] : memref<32x128xf32, #tpu.memory_space<vmem>>, vector<32x128xf32>
    %cst_21 = arith.constant dense<0.000000e+00> : vector<8x128xf32>
    %28 = tpu.matmul %26, %27, %cst_21 {dimension_numbers = #tpu.dot_dimension_numbers<[1], [0], [0], [1], [0, 0, 1, 1], [], []>} : vector<8x32xf32>, vector<32x128xf32>, vector<8x128xf32> -> vector<8x128xf32>
    %c0_22 = arith.constant 0 : index
    %c0_23 = arith.constant 0 : index
    %29 = vector.load %arg8[%c0_22, %c0_23] : memref<1x128xf32, #tpu.memory_space<vmem>>, vector<1x128xf32>
    %30 = vector.broadcast %29 : vector<1x128xf32> to vector<8x128xf32>
    %31 = arith.addf %28, %30 : vector<8x128xf32>
    %cst_24 = arith.constant dense<0xFF800000> : vector<8xf32>
    %32 = vector.multi_reduction <maximumf>, %31, %cst_24 [1] : vector<8x128xf32> to vector<8xf32>
    %33 = vector.shape_cast %32 : vector<8xf32> to vector<8x1xf32>
    %34 = vector.broadcast %33 : vector<8x1xf32> to vector<8x128xf32>
    %35 = arith.subf %31, %34 : vector<8x128xf32>
    %36 = math.exp %35 : vector<8x128xf32>
    %cst_25 = arith.constant dense<0.000000e+00> : vector<8xf32>
    %37 = vector.multi_reduction <add>, %36, %cst_25 [1] : vector<8x128xf32> to vector<8xf32>
    %38 = vector.shape_cast %37 : vector<8xf32> to vector<8x1xf32>
    %39 = vector.broadcast %38 : vector<8x1xf32> to vector<8x128xf32>
    %40 = arith.divf %36, %39 : vector<8x128xf32>
    %c0_26 = arith.constant 0 : index
    %c0_27 = arith.constant 0 : index
    %41 = vector.load %arg9[%c0_26, %c0_27] : memref<8x128xf32, #tpu.memory_space<vmem>>, vector<8x128xf32>
    tpu.vector_store %arg9[%c0_26, %c0_27], %40 {strides = array<i32>} : memref<8x128xf32, #tpu.memory_space<vmem>>, vector<8x128xf32>,
    return
  }
}

</mosaic_0001>

<bundles_post_ra>
// kernel: tpu_custom_call.1
= control target key start
LH: loop header
LB: loop body
LE: loop exit
PB: predicated region body
PF: predicated region fallthrough
CT: control target
= control target key end

     0   :  { %14 = vsyncpa [#allocation3], 0  ;;  %s525_s0 = inlined_call_operand.vmem [shape: f32[16,8], index: 0, kind: input, shape index: {}]   ;;  %s526_s1 = inlined_call_operand.vmem [shape: s8[16,16], index: 1, kind: input, shape index: {}]   ;;  %s527_s2 = inlined_call_operand.vmem [shape: f32[8,16], index: 2, kind: input, shape index: {}]   ;;  %s528_s3 = inlined_call_operand.vmem [shape: f32[8,64], index: 3, kind: input, shape index: {}]   ;;  %s529_s4 = inlined_call_operand.vmem [shape: f32[1,32], index: 4, kind: input, shape index: {}]   ;;  %s530_s5 = inlined_call_operand.hbm [shape: f32[32,64], index: 5, kind: input, shape index: {}]   ;;  %s531_s6 = inlined_call_operand.vmem [shape: f32[1,32], index: 6, kind: input, shape index: {}]   ;;  %s532_s7 = inlined_call_operand.hbm [shape: f32[32,128], index: 7, kind: input, shape index: {}]   ;;  %s533_s8 = inlined_call_operand.vmem [shape: f32[1,128], index: 8, kind: input, shape index: {}]   ;;  %s534_s9 = inlined_call_operand.hbm [shape: f32[8,128], index: 9, kind: output, shape index: {}]  }
   0x1   :  { %15 = vsyncpa [#allocation6], 0 }
   0x2   :  { %16 = vsyncpa [#allocation4], 0  ;;  %s31_s11 = sshll.u32 %s530_s5, 4  ;;  %s424_s12 = smov [#allocation2]   ;;  %s32_s11 = int_to_ptr.hbm [resolvable:$true] %s31_s11 }
   0x3   :  { %s33_s13 = sshll.u32 %s424_s12, 4  ;;  %s46_s16 = sshll.u32 %s532_s7, 4  ;;  %s34_s13 = int_to_ptr.vmem [resolvable:$true] %s33_s13  ;;  %s47_s16 = int_to_ptr.hbm [resolvable:$true] %s46_s16 }
   0x4   :  { %s425_s17 = smov 128   ;;  %s426_s18 = smov 8  }
   0x5   :  { %39 = dma.hbm_to_vmem [thread:$0]  %s32_s11, 512, %s34_s13, [#allocation3], %s425_s17, %s425_s17, %s426_s18  }
   0x6   :  { %s427_s19 = smov [#allocation5]  }
   0x7   :  { %s48_s20 = sshll.u32 %s427_s19, 4  ;;  %s49_s20 = int_to_ptr.vmem [resolvable:$true] %s48_s20 }
   0x8   :  { %54 = dma.hbm_to_vmem [thread:$0]  %s47_s16, 512, %s49_s20, [#allocation6], %s425_s17, %s425_s17, %s426_s18  }
   0x9   :  { %418 = dma.done.wait [#allocation3], 512  }
   0xa   :  { %419 = vsyncadd [#allocation3], 4294966784 }
   0xb   :  { %420 = dma.done.wait [#allocation6], 512  }
   0xc   :  { %421 = vsyncadd [#allocation6], 4294966784  ;;  %vm74_vm0 = vcmask 64512   ;;  %v73_v0 = vld [vmem:[%s528_s3] sm:$0xff]  ;;  %v66_v2 = vld [vmem:[%s525_s0 + $0x8] sm:$0xff]  ;;  %s428_s25 = smov 96  }
   0xd   :  { %v65_v1 = vld [vmem:[%s525_s0] sm:$0xff]  ;;  %96 = vmatpush.msra.mxu0 %v73_v0  ;;  %vm112_vm1 = vcmask 130048   ;;  %v153_v10 = vld [vmem:[#allocation2 + $0x18] sm:$0xff]  ;;  %v152_v11 = vld [vmem:[#allocation2 + $0x10] sm:$0xff]  ;;  %vm154_vm2 = vcmask 261120   ;;  %s308_s12 = sshll.u32 %s534_s9, 4  ;;  %s309_s12 = int_to_ptr.hbm [resolvable:$true] %s308_s12 }
   0xe   :  { %319 = vmatmul.msk.f32.vlgmr.msra.gmra.mxu0 %vm74_vm0, %v65_v1  ;;  %v330_v4 = vld [vmem:[%s526_s1] sm:$0xf]   ;;  %173 = vmatpush.msra.mxu2 %v153_v10  ;;  %v151_v12 = vld [vmem:[#allocation2 + $0x8] sm:$0xff]  ;;  %v250_v27 = vld [vmem:[#allocation5 + $0x18] sm:$0xff] }
   0xf   :  { %v331_v5 = vunpack.c.0.s8 %v330_v4  ;;  %v332_v8 = vunpack.c.1.s8 %v330_v4  ;;  %v150_v13 = vld [vmem:[#allocation2] sm:$0xff]  ;;  %v249_v28 = vld [vmem:[#allocation5 + $0x10] sm:$0xff]  ;;  %v248_v29 = vld [vmem:[#allocation5 + $0x8] sm:$0xff] }
  0x10   :  { %174 = vmatpush.msra.mxu2 %v152_v11  ;;  %v339_v15 = vld [vmem:[%s529_s4] ss:$0 sm:$0xff] }
  0x11   :  { %v71_v7 = vcvt.s32.f32 %v331_v5  ;;  %v72_v9 = vcvt.s32.f32 %v332_v8  ;;  %v340_v34 = vld [vmem:[%s531_s6] ss:$0 sm:$0xff] }
  0x12   :  { %175 = vmatpush.msra.mxu2 %v151_v12  ;;  %v223_v41 = vld [vmem:[%s527_s2] sm:$0xff]  ;;  %s429_s2 = smov [#allocation7]  }
  0x13   :  { %v247_v42 = vld [vmem:[#allocation5] sm:$0xff] }
  0x14   :  { %176 = vmatpush.msra.mxu2 %v150_v13  ;;  %v341_v44 = vld [vmem:[%s533_s8] ss:$0 sm:$0xff]  ;;  %s306_s8 = sshll.u32 %s429_s2, 4  ;;  %s307_s8 = int_to_ptr.vmem [resolvable:$true] %s306_s8 }
  0x16   :  { %320 = vmatmul.msk.f32.gmra.mxu0 %vm74_vm0, %v66_v2 }
  0x8b   :  { %v98_v3 = vpop.f32.mrf.mxu0 }
  0x8c   :  { %106 = vrot.lane.b32.xlu0 %v98_v3, %s428_s25 }
  0x93   :  { %v101_v6 = vpop.f32.mrf.mxu0 }
  0x94   :  { %108 = vrot.lane.b32.xlu0 %v101_v6, %s428_s25  ;;  %133 = vmatpush.msra.mxu1 %v101_v6 }
  0x96   :  { %134 = vmatpush.msra.mxu1 %v98_v3 }
  0x97   :  { %321 = vmatmul.msk.f32.vlgmr.msra.gmra.mxu1 %vm112_vm1, %v71_v7 }
  0x98   :  { %270 = vmatpush.msrb.mxu1 %v250_v27 }
  0x9a   :  { %271 = vmatpush.msrb.mxu1 %v249_v28 }
  0x9c   :  { %272 = vmatpush.msrb.mxu1 %v248_v29 }
  0x9e   :  { %273 = vmatpush.msrb.mxu1 %v247_v42 }
  0x9f   :  { %322 = vmatmul.msk.f32.gmra.mxu1 %vm112_vm1, %v72_v9 }
  0xfe   :  { %v107_v14 = vpop.permute.xlu0 %106 }
 0x106   :  { %v109_v20 = vpop.permute.xlu0 %108 }
 0x114   :  { %v136_v16 = vpop.f32.mrf.mxu1 }
 0x115   :  { %v137_v17 = vadd.f32 %v136_v16, %v107_v14 }
 0x117   :  { %v146_v18 = vadd.f32 %v339_v15, %v137_v17 }
 0x119   :  { %v148_v19 = vmax.f32 %v146_v18, 0.0 }
 0x11b   :  { %323 = vmatmul.msk.f32.vlgmr.msra.gmra.mxu2 %vm154_vm2, %v148_v19 }
 0x11c   :  { %v139_v21 = vpop.f32.mrf.mxu1 }
 0x11d   :  { %v140_v22 = vadd.f32 %v139_v21, %v109_v20 }
 0x11f   :  { %v147_v23 = vadd.f32 %v339_v15, %v140_v22 }
 0x121   :  { %v149_v24 = vmax.f32 %v147_v23, 0.0 }
 0x123   :  { %324 = vmatmul.msk.f32.gmra.mxu2 %vm154_vm2, %v149_v24 }
 0x19e   :  { %v178_v25 = vpop.f32.mrf.mxu2 }
 0x1a6   :  { %v181_v26 = vpop.f32.mrf.mxu2 }
 0x1a7   :  { %188 = vrot.lane.b32.xlu1 %v181_v26, %s428_s25  ;;  %206 = vmatpush.msra.mxu3 %v181_v26 }
 0x1a9   :  { %207 = vmatpush.msra.mxu3 %v178_v25 }
 0x1aa   :  { %325 = vmatmul.msk.f32.vlgmr.msra.gmra.mxu3 %vm112_vm1, %v71_v7 }
 0x1af   :  { %186 = vrot.lane.b32.xlu1 %v178_v25, %s428_s25 }
 0x1b2   :  { %326 = vmatmul.msk.f32.gmra.mxu3 %vm112_vm1, %v72_v9 }
 0x219   :  { %v189_v30 = vpop.permute.xlu1 %188 }
 0x221   :  { %v187_v32 = vpop.permute.xlu1 %186 }
 0x22d   :  { %v209_v31 = vpop.f32.mrf.mxu3 }
 0x22e   :  { %v210_v33 = vadd.f32 %v209_v31, %v187_v32 }
 0x230   :  { %v219_v38 = vadd.f32 %v340_v34, %v210_v33 }
 0x232   :  { %v221_v40 = vmax.f32 %v219_v38, 0.0 }
 0x235   :  { %v212_v35 = vpop.f32.mrf.mxu3 }
 0x236   :  { %v213_v36 = vadd.f32 %v212_v35, %v189_v30 }
 0x238   :  { %v220_v37 = vadd.f32 %v340_v34, %v213_v36 }
 0x23a   :  { %v222_v39 = vmax.f32 %v220_v37, 0.0 }
 0x23c   :  { %241 = vmatpush.msrb.mxu0 %v222_v39 }
 0x23e   :  { %242 = vmatpush.msrb.mxu0 %v221_v40 }
 0x23f   :  { %327 = vmatmul.msk.f32.vlgmr.msrb.gmra.mxu0 %vm112_vm1, %v223_v41 }
 0x2bc   :  { %v244_v43 = vpop.f32.mrf.mxu0 }
 0x2bd   :  { %328 = vmatmul.msk.f32.vlgmr.msrb.gmra.mxu1 %vm154_vm2, %v244_v43 }
 0x33a   :  { %v275_v45 = vpop.f32.mrf.mxu1 }
 0x33b   :  { %v276_v46 = vadd.f32 %v341_v44, %v275_v45 }
 0x33d   :  { %278 = vmax.xlane.f32.xlu2 %v276_v46 }
 0x3b0   :  { %v279_v47 = vpop.xlane.xlu2 %278 }
 0x3b1   :  { %v280_v48 = vsub.f32 %v276_v46, %v279_v47 }
 0x3b3   :  { %v281_v49 = vmul.f32 1.442695, %v280_v48 }
 0x3b5   :  { %342 = vpow2.f32 %v281_v49 }
 0x3bb   :  { %v343_v50 = vpop.eup %342 }
 0x3bc   :  { %283 = vadd.xlane.f32.xlu2 %v343_v50 }
 0x42f   :  { %v284_v51 = vpop.xlane.xlu2 %283 }
 0x430   :  { %344 = vrcp.f32 %v284_v51  ;;  %v296_v55 = vand.u32 2147483648, %v284_v51  ;;  %v294_v57 = vand.u32 2147483647, %v284_v51  ;;  %vm290_vm4 = vweird.f32 %v284_v51 }
 0x432   :  { %v297_v59 = vor.u32 1.1754944e-38, %v296_v55  ;;  %vm295_vm6 = vcmp.eq.f32.partialorder %v294_v57, 8.507059e+37 }
 0x436   :  { %v345_v52 = vpop.eup %344 }
 0x437   :  { %v286_v53 = vmul.f32 %v345_v52, %v284_v51  ;;  %vm291_vm3 = vweird.f32 %v345_v52 }
 0x438   :  { %vm292_vm5 = vmor %vm290_vm4, %vm291_vm3 }
 0x439   :  { %v287_v54 = vsub.f32 1.0, %v286_v53 }
 0x43b   :  { %v288_v56 = vmul.f32 %v345_v52, %v287_v54 }
 0x43d   :  { %v289_v58 = vadd.f32 %v345_v52, %v288_v56 }
 0x43f   :  { %v293_v60 = vsel %vm292_vm5, %v345_v52, %v289_v58 }
 0x440   :  { %v298_v61 = vsel %vm295_vm6, %v297_v59, %v293_v60 }
 0x441   :  { %v299_v62 = vmul.f32 %v343_v50, %v298_v61 }
 0x443   :  { %300 = vst [vmem:[#allocation7] sm:$0xff] %v299_v62 }
 0x444   :  { %311 = dma.vmem_to_hbm [thread:$0]  %s307_s8, 128, %s309_s12, [#allocation4]  }
 0x445   :  { %422 = dma.done.wait [#allocation4], 128  }
 0x446   :  { %423 = vsyncadd [#allocation4], 4294967168 }
 0x447   :  { %316 = vsyncpa [#allocation3], 1 }
 0x448   :  { %317 = vsyncpa [#allocation6], 1 }
 0x449   :  { %318 = vsyncpa [#allocation4], 1 }

</bundles_post_ra>
